<compile_context>
chip_gen: v5e
topology: v5e:2x2
jax: 0.10.0
libtpu: 0.0.40
codegen_flags: <defaults>
</compile_context>

<pallas_src>
import jax
import jax.numpy as jnp
from jax.experimental import pallas as pl
from jax.experimental.pallas import tpu as pltpu

HIDDEN = 32      # hidden_size
VOCAB = 50       # output_size
MAX_LEN = 16     # max_length (number of encoder positions)
LANES = 128


def _pad_lanes(v, width=LANES):
    n = v.shape[-1]
    if n == width:
        return v
    return jnp.concatenate(
        [v, jnp.zeros((v.shape[0], width - n), jnp.float32)], axis=-1)


def _pack_slab(logp, h, c, aw):
    """Pack all per-step outputs into one lane-dense (8,128) slab."""
    return jnp.concatenate(
        [_pad_lanes(logp), _pad_lanes(h), _pad_lanes(c), _pad_lanes(aw),
         jnp.zeros((4, LANES), jnp.float32)], axis=0)


def _decoder_step(xh, c0, enc, lstm_ref, wblk_ref):
    """One decoder step. xh=(1,2H) lane-concat of [x ; h_prev], c0=(1,H)."""
    H, L, V = HIDDEN, MAX_LEN, VOCAB

    # --- fused single-step LSTM (PyTorch gate order i, f, g, o) ---
    gates = (jnp.dot(xh, lstm_ref[0:2 * H, :], preferred_element_type=jnp.float32)
             + lstm_ref[2 * H:2 * H + 1, :])                               # (1, 4H)
    i_g = jax.nn.sigmoid(gates[:, 0:H])
    f_g = jax.nn.sigmoid(gates[:, H:2 * H])
    g_g = jnp.tanh(gates[:, 2 * H:3 * H])
    o_g = jax.nn.sigmoid(gates[:, 3 * H:4 * H])
    c = f_g * c0 + i_g * g_g
    h = o_g * jnp.tanh(c)

    # --- attn(cat(output[0], h_n[-1])); both halves == h, weight pre-folded ---
    scores = (jnp.dot(h, wblk_ref[0:H, 0:L], preferred_element_type=jnp.float32)
              + wblk_ref[2 * H:2 * H + 1, 0:L])                            # (1, L)
    scores = scores - jnp.max(scores, axis=1, keepdims=True)
    e = jnp.exp(scores)
    aw = e * pl.reciprocal(jnp.sum(e, axis=1, keepdims=True), approx=True)

    # --- bmm(attn_weights, encoder_outputs) + attn_combine + ReLU (fused dot) ---
    ctx = jnp.dot(aw, enc, preferred_element_type=jnp.float32)             # (1, H)
    hc = jnp.concatenate([h, ctx], axis=1)                                 # (1, 2H)
    pre = (jnp.dot(hc, wblk_ref[0:2 * H, L:L + H],
                   preferred_element_type=jnp.float32)
           + wblk_ref[2 * H:2 * H + 1, L:L + H])
    act = jnp.maximum(pre, 0.0)

    # --- out Linear + log_softmax ---
    logits = (jnp.dot(act, wblk_ref[0:H, L + H:L + H + V],
                      preferred_element_type=jnp.float32)
              + wblk_ref[2 * H:2 * H + 1, L + H:L + H + V])
    m = jnp.max(logits, axis=1, keepdims=True)
    sh = logits - m
    lse = jnp.log(jnp.sum(jnp.exp(sh), axis=1, keepdims=True))
    return sh - lse, h, c, aw


def _decoder_kernel(state_ref, enc_ref, lstm_ref, wblk_ref, out_ref):
    """Single-step kernel. state_ref=(2,2H): row0=[x;h0], row1=[c0;0]."""
    H = HIDDEN
    xh = state_ref[0:1, :]
    c0 = state_ref[1:2, 0:H]
    logp, h, c, aw = _decoder_step(xh, c0, enc_ref[...], lstm_ref, wblk_ref)
    out_ref[...] = _pack_slab(logp, h, c, aw)


def _decoder_seq_kernel(x_ref, init_ref, enc_ref, lstm_ref, wblk_ref, out_ref,
                        h_sc, c_sc):
    """grid=(T,) teacher-forced decode; h/c carried in VMEM scratch."""
    t = pl.program_id(0)

    @pl.when(t == 0)
    def _():
        h_sc[...] = init_ref[0:1, :]
        c_sc[...] = init_ref[1:2, :]

    x = x_ref[0]                                   # (1, H)
    xh = jnp.concatenate([x, h_sc[...]], axis=1)   # (1, 2H)
    logp, h, c, aw = _decoder_step(xh, c_sc[...], enc_ref[...], lstm_ref, wblk_ref)
    h_sc[...] = h
    c_sc[...] = c
    out_ref[...] = _pack_slab(logp, h, c, aw)


def init_params(key, hidden=HIDDEN, vocab=VOCAB, max_len=MAX_LEN):
    ks = jax.random.split(key, 11)
    s_lstm = 1.0 / (hidden ** 0.5)
    s_attn = 1.0 / ((2 * hidden) ** 0.5)
    s_out = 1.0 / (hidden ** 0.5)

    def u(k, shape, s):
        return jax.random.uniform(k, shape, jnp.float32, -s, s)

    return {
        "embedding": jax.random.normal(ks[0], (vocab, hidden), jnp.float32),
        # LSTM weights stored as (in, 4H); gate order i, f, g, o
        "w_ih": u(ks[1], (hidden, 4 * hidden), s_lstm),
        "w_hh": u(ks[2], (hidden, 4 * hidden), s_lstm),
        "b_ih": u(ks[3], (1, 4 * hidden), s_lstm),
        "b_hh": u(ks[4], (1, 4 * hidden), s_lstm),
        "attn_w": u(ks[5], (2 * hidden, max_len), s_attn),
        "attn_b": u(ks[6], (1, max_len), s_attn),
        "comb_w": u(ks[7], (2 * hidden, hidden), s_attn),
        "comb_b": u(ks[8], (1, hidden), s_attn),
        "out_w": u(ks[9], (hidden, vocab), s_out),
        "out_b": u(ks[10], (1, vocab), s_out),
    }


def pack_params(params, hidden=HIDDEN, vocab=VOCAB, max_len=MAX_LEN):
    """One-time packing: fold biases / duplicated attn weight, lane-pack small mats."""
    H, L, V = hidden, max_len, vocab
    rows = ((2 * H + 1 + 7) // 8) * 8    # pad sublanes to a multiple of 8

    lstm = jnp.zeros((rows, 4 * H), jnp.float32)
    lstm = lstm.at[0:H, :].set(params["w_ih"])
    lstm = lstm.at[H:2 * H, :].set(params["w_hh"])
    lstm = lstm.at[2 * H, :].set((params["b_ih"] + params["b_hh"])[0])

    # one lane-dense block: attn (lanes 0:L), comb (L:L+H), out (L+H:L+H+V)
    wblk = jnp.zeros((rows, LANES), jnp.float32)
    wblk = wblk.at[0:H, 0:L].set(params["attn_w"][0:H, :] + params["attn_w"][H:2 * H, :])
    wblk = wblk.at[2 * H, 0:L].set(params["attn_b"][0])
    wblk = wblk.at[0:2 * H, L:L + H].set(params["comb_w"])
    wblk = wblk.at[2 * H, L:L + H].set(params["comb_b"][0])
    wblk = wblk.at[0:H, L + H:L + H + V].set(params["out_w"])
    wblk = wblk.at[2 * H, L + H:L + H + V].set(params["out_b"][0])

    return {"emb": params["embedding"], "lstm": lstm, "wblk": wblk}


def attn_decoder_forward(packed, token, hidden_state, encoder_outputs,
                         hidden=HIDDEN, vocab=VOCAB, max_len=MAX_LEN):
    """Mirrors AttnDecoderRNN_layers.forward for num_layers=1 (eval mode)."""
    H, L, V = hidden, max_len, vocab
    h0, c0 = hidden_state
    h0 = h0.reshape(1, H)
    c0 = c0.reshape(1, H)

    # embedding row gather in the wrapper: only (1,H) enters the kernel
    x = jnp.take(packed["emb"], jnp.asarray(token, jnp.int32), axis=0).reshape(1, H)
    # TODO(synk): dropout(embedded) skipped (eval mode identity)

    xrow = jnp.concatenate([x, h0], axis=1)                                   # (1, 2H)
    crow = jnp.concatenate([c0, jnp.zeros((1, H), jnp.float32)], axis=1)      # (1, 2H)
    state = jnp.concatenate([xrow, crow], axis=0)                             # (2, 2H)

    vmem = pl.BlockSpec(memory_space=pltpu.MemorySpace.VMEM)
    slab = pl.pallas_call(
        _decoder_kernel,
        out_shape=jax.ShapeDtypeStruct((8, LANES), jnp.float32),
        in_specs=[vmem, vmem, vmem, vmem],
        out_specs=vmem,
    )(state, encoder_outputs, packed["lstm"], packed["wblk"])

    logp = slab[0:1, 0:V]
    h_n = slab[1:2, 0:H].reshape(1, 1, H)
    c_n = slab[2:3, 0:H].reshape(1, 1, H)
    attn_w = slab[3:4, 0:L]
    return logp, (h_n, c_n), attn_w


def attn_decoder_forward_seq(packed, tokens, hidden_state, encoder_outputs,
                             hidden=HIDDEN, vocab=VOCAB, max_len=MAX_LEN):
    """T teacher-forced decode steps in ONE pallas_call (grid=(T,), weights resident)."""
    H, L, V = hidden, max_len, vocab
    T = int(tokens.shape[0])
    h0, c0 = hidden_state
    init = jnp.concatenate([h0.reshape(1, H), c0.reshape(1, H)], axis=0)      # (2, H)
    xs = jnp.take(packed["emb"], tokens.astype(jnp.int32), axis=0).reshape(T, 1, H)

    grid_spec = pltpu.PrefetchScalarGridSpec(
        num_scalar_prefetch=0,
        grid=(T,),
        in_specs=[
            pl.BlockSpec((1, 1, H), lambda t: (t, 0, 0)),          # embedded token row
            pl.BlockSpec((2, H), lambda t: (0, 0)),                # init h/c
            pl.BlockSpec((L, H), lambda t: (0, 0)),                # encoder outputs
            pl.BlockSpec(packed["lstm"].shape, lambda t: (0, 0)),  # resident weights
            pl.BlockSpec(packed["wblk"].shape, lambda t: (0, 0)),  # resident weights
        ],
        out_specs=pl.BlockSpec((8, LANES), lambda t: (t, 0)),
        scratch_shapes=[pltpu.VMEM((1, H), jnp.float32),           # h carry
                        pltpu.VMEM((1, H), jnp.float32)],          # c carry
    )
    slabs = pl.pallas_call(
        _decoder_seq_kernel,
        out_shape=jax.ShapeDtypeStruct((8 * T, LANES), jnp.float32),
        grid_spec=grid_spec,
        compiler_params=pltpu.CompilerParams(dimension_semantics=("arbitrary",)),
    )(xs, init, encoder_outputs, packed["lstm"], packed["wblk"])

    slabs = slabs.reshape(T, 8, LANES)
    logp = slabs[:, 0, 0:V]
    attn_w = slabs[:, 3, 0:L]
    h_n = slabs[T - 1, 1, 0:H].reshape(1, 1, H)
    c_n = slabs[T - 1, 2, 0:H].reshape(1, 1, H)
    return logp, (h_n, c_n), attn_w


def reference_forward(params, token, hidden_state, encoder_outputs, hidden=HIDDEN):
    """Pure-JAX reference matching the PyTorch forward (eval mode)."""
    H = hidden
    h0, c0 = hidden_state
    h0 = h0.reshape(1, H)
    c0 = c0.reshape(1, H)
    x = params["embedding"][token].reshape(1, H)
    gates = x @ params["w_ih"] + params["b_ih"] + h0 @ params["w_hh"] + params["b_hh"]
    i_g = jax.nn.sigmoid(gates[:, 0:H])
    f_g = jax.nn.sigmoid(gates[:, H:2 * H])
    g_g = jnp.tanh(gates[:, 2 * H:3 * H])
    o_g = jax.nn.sigmoid(gates[:, 3 * H:4 * H])
    c = f_g * c0 + i_g * g_g
    h = o_g * jnp.tanh(c)
    attn_in = jnp.concatenate([h, h], axis=1)
    aw = jax.nn.softmax(attn_in @ params["attn_w"] + params["attn_b"], axis=1)
    ctx = aw @ encoder_outputs
    comb = jnp.concatenate([h, ctx], axis=1) @ params["comb_w"] + params["comb_b"]
    comb = jnp.maximum(comb, 0.0)
    logits = comb @ params["out_w"] + params["out_b"]
    return jax.nn.log_softmax(logits, axis=1), (h, c), aw


if __name__ == "__main__":
    key = jax.random.PRNGKey(0)
    k_params, k_h, k_c, k_enc = jax.random.split(key, 4)

    params = init_params(k_params)
    packed = pack_params(params)

    token = jnp.int32(3)
    h0 = 0.1 * jax.random.normal(k_h, (1, 1, HIDDEN), jnp.float32)
    c0 = 0.1 * jax.random.normal(k_c, (1, 1, HIDDEN), jnp.float32)
    encoder_outputs = jax.random.normal(k_enc, (MAX_LEN, HIDDEN), jnp.float32)

    # --- single step (matches module.forward) ---
    logp, (h_n, c_n), attn_w = attn_decoder_forward(
        packed, token, (h0, c0), encoder_outputs)
    jax.block_until_ready((logp, h_n, c_n, attn_w))

    r_logp, (r_h, r_c), r_aw = reference_forward(params, token, (h0, c0), encoder_outputs)
    # h/c are pre-attention -> tight; logp/attn_w see the approx reciprocal -> looser
    assert jnp.allclose(h_n.reshape(1, HIDDEN), r_h, atol=1e-5, rtol=1e-4)
    assert jnp.allclose(c_n.reshape(1, HIDDEN), r_c, atol=1e-5, rtol=1e-4)
    assert jnp.allclose(attn_w, r_aw, atol=1e-2, rtol=1e-2)
    assert jnp.allclose(logp, r_logp, atol=1e-2, rtol=1e-2)
    assert logp.shape == (1, VOCAB) and attn_w.shape == (1, MAX_LEN)

    # --- T teacher-forced steps in one pallas_call ---
    tokens = jnp.array([3, 7, 1, 0, 12, 5], dtype=jnp.int32)
    s_logp, (s_h, s_c), s_aw = attn_decoder_forward_seq(
        packed, tokens, (h0, c0), encoder_outputs)
    jax.block_until_ready((s_logp, s_h, s_c, s_aw))

    rh, rc = h0.reshape(1, HIDDEN), c0.reshape(1, HIDDEN)
    for i in range(tokens.shape[0]):
        r_lp, (rh, rc), r_a = reference_forward(
            params, tokens[i], (rh, rc), encoder_outputs)
        assert jnp.allclose(s_logp[i:i + 1], r_lp, atol=1e-2, rtol=1e-2)
        assert jnp.allclose(s_aw[i:i + 1], r_a, atol=1e-2, rtol=1e-2)
    assert jnp.allclose(s_h.reshape(1, HIDDEN), rh, atol=1e-4, rtol=1e-3)
    assert jnp.allclose(s_c.reshape(1, HIDDEN), rc, atol=1e-4, rtol=1e-3)

    print("KERNEL_OK")
</pallas_src>

<mosaic_0001>
module attributes {stable_mosaic.version = 11 : i64} {
  func.func @_decoder_kernel(%arg0: memref<2x64xf32, #tpu.memory_space<vmem>>, %arg1: memref<16x32xf32, #tpu.memory_space<vmem>>, %arg2: memref<72x128xf32, #tpu.memory_space<vmem>>, %arg3: memref<72x128xf32, #tpu.memory_space<vmem>>, %arg4: memref<8x128xf32, #tpu.memory_space<vmem>>) attributes {dimension_semantics = [], scalar_prefetch = 0 : i64, scratch_operands = 0 : i64, tpu.core_type = #tpu.core_type<tc>} {
    %c0 = arith.constant 0 : index
    %c0_0 = arith.constant 0 : index
    %0 = vector.load %arg0[%c0, %c0_0] : memref<2x64xf32, #tpu.memory_space<vmem>>, vector<1x64xf32>
    %c1 = arith.constant 1 : index
    %c0_1 = arith.constant 0 : index
    %1 = vector.load %arg0[%c1, %c0_1] : memref<2x64xf32, #tpu.memory_space<vmem>>, vector<1x32xf32>
    %c0_2 = arith.constant 0 : index
    %c0_3 = arith.constant 0 : index
    %2 = vector.load %arg1[%c0_2, %c0_3] : memref<16x32xf32, #tpu.memory_space<vmem>>, vector<16x32xf32>
    %c0_4 = arith.constant 0 : index
    %c0_5 = arith.constant 0 : index
    %3 = vector.load %arg2[%c0_4, %c0_5] : memref<72x128xf32, #tpu.memory_space<vmem>>, vector<64x128xf32>
    %cst = arith.constant dense<0.000000e+00> : vector<1x128xf32>
    %4 = tpu.matmul %0, %3, %cst {dimension_numbers = #tpu.dot_dimension_numbers<[1], [0], [0], [1], [0, 0, 1, 1], [], []>} : vector<1x64xf32>, vector<64x128xf32>, vector<1x128xf32> -> vector<1x128xf32>
    %c64 = arith.constant 64 : index
    %c0_6 = arith.constant 0 : index
    %5 = vector.load %arg2[%c64, %c0_6] : memref<72x128xf32, #tpu.memory_space<vmem>>, vector<1x128xf32>
    %6 = arith.addf %4, %5 : vector<1x128xf32>
    %7 = vector.extract_strided_slice %6 {offsets = [0, 0], sizes = [1, 32], strides = [1, 1]} : vector<1x128xf32> to vector<1x32xf32>
    %8 = arith.negf %7 : vector<1x32xf32>
    %9 = math.exp %8 : vector<1x32xf32>
    %cst_7 = arith.constant 1.000000e+00 : f32
    %10 = vector.broadcast %cst_7 : f32 to vector<1x32xf32>
    %11 = arith.addf %10, %9 : vector<1x32xf32>
    %12 = arith.divf %10, %11 : vector<1x32xf32>
    %13 = vector.extract_strided_slice %6 {offsets = [0, 32], sizes = [1, 32], strides = [1, 1]} : vector<1x128xf32> to vector<1x32xf32>
    %14 = arith.negf %13 : vector<1x32xf32>
    %15 = math.exp %14 : vector<1x32xf32>
    %cst_8 = arith.constant 1.000000e+00 : f32
    %16 = vector.broadcast %cst_8 : f32 to vector<1x32xf32>
    %17 = arith.addf %16, %15 : vector<1x32xf32>
    %18 = arith.divf %16, %17 : vector<1x32xf32>
    %19 = vector.extract_strided_slice %6 {offsets = [0, 64], sizes = [1, 32], strides = [1, 1]} : vector<1x128xf32> to vector<1x32xf32>
    %20 = math.tanh %19 : vector<1x32xf32>
    %21 = vector.extract_strided_slice %6 {offsets = [0, 96], sizes = [1, 32], strides = [1, 1]} : vector<1x128xf32> to vector<1x32xf32>
    %22 = arith.negf %21 : vector<1x32xf32>
    %23 = math.exp %22 : vector<1x32xf32>
    %cst_9 = arith.constant 1.000000e+00 : f32
    %24 = vector.broadcast %cst_9 : f32 to vector<1x32xf32>
    %25 = arith.addf %24, %23 : vector<1x32xf32>
    %26 = arith.divf %24, %25 : vector<1x32xf32>
    %27 = arith.mulf %18, %1 : vector<1x32xf32>
    %28 = arith.mulf %12, %20 : vector<1x32xf32>
    %29 = arith.addf %27, %28 : vector<1x32xf32>
    %30 = math.tanh %29 : vector<1x32xf32>
    %31 = arith.mulf %26, %30 : vector<1x32xf32>
    %c0_10 = arith.constant 0 : index
    %c0_11 = arith.constant 0 : index
    %32 = vector.load %arg3[%c0_10, %c0_11] : memref<72x128xf32, #tpu.memory_space<vmem>>, vector<32x16xf32>
    %cst_12 = arith.constant dense<0.000000e+00> : vector<1x16xf32>
    %33 = tpu.matmul %31, %32, %cst_12 {dimension_numbers = #tpu.dot_dimension_numbers<[1], [0], [0], [1], [0, 0, 1, 1], [], []>} : vector<1x32xf32>, vector<32x16xf32>, vector<1x16xf32> -> vector<1x16xf32>
    %c64_13 = arith.constant 64 : index
    %c0_14 = arith.constant 0 : index
    %34 = vector.load %arg3[%c64_13, %c0_14] : memref<72x128xf32, #tpu.memory_space<vmem>>, vector<1x16xf32>
    %35 = arith.addf %33, %34 : vector<1x16xf32>
    %cst_15 = arith.constant dense<0xFF800000> : vector<1xf32>
    %36 = vector.multi_reduction <maximumf>, %35, %cst_15 [1] : vector<1x16xf32> to vector<1xf32>
    %37 = vector.shape_cast %36 : vector<1xf32> to vector<1x1xf32>
    %38 = vector.broadcast %37 : vector<1x1xf32> to vector<1x16xf32>
    %39 = arith.subf %35, %38 : vector<1x16xf32>
    %40 = math.exp %39 : vector<1x16xf32>
    %cst_16 = arith.constant dense<0.000000e+00> : vector<1xf32>
    %41 = vector.multi_reduction <add>, %40, %cst_16 [1] : vector<1x16xf32> to vector<1xf32>
    %42 = vector.shape_cast %41 : vector<1xf32> to vector<1x1xf32>
    %43 = tpu.reciprocal %42 {approx = true} : vector<1x1xf32> -> vector<1x1xf32>
    %44 = vector.broadcast %43 : vector<1x1xf32> to vector<1x16xf32>
    %45 = arith.mulf %40, %44 : vector<1x16xf32>
    %cst_17 = arith.constant dense<0.000000e+00> : vector<1x32xf32>
    %46 = tpu.matmul %45, %2, %cst_17 {dimension_numbers = #tpu.dot_dimension_numbers<[1], [0], [0], [1], [0, 0, 1, 1], [], []>} : vector<1x16xf32>, vector<16x32xf32>, vector<1x32xf32> -> vector<1x32xf32>
    %47 = tpu.concatenate %31, %46 in 1 : vector<1x32xf32>, vector<1x32xf32> -> vector<1x64xf32>
    %c0_18 = arith.constant 0 : index
    %c16 = arith.constant 16 : index
    %48 = vector.load %arg3[%c0_18, %c16] : memref<72x128xf32, #tpu.memory_space<vmem>>, vector<64x32xf32>
    %cst_19 = arith.constant dense<0.000000e+00> : vector<1x32xf32>
    %49 = tpu.matmul %47, %48, %cst_19 {dimension_numbers = #tpu.dot_dimension_numbers<[1], [0], [0], [1], [0, 0, 1, 1], [], []>} : vector<1x64xf32>, vector<64x32xf32>, vector<1x32xf32> -> vector<1x32xf32>
    %c64_20 = arith.constant 64 : index
    %c16_21 = arith.constant 16 : index
    %50 = vector.load %arg3[%c64_20, %c16_21] : memref<72x128xf32, #tpu.memory_space<vmem>>, vector<1x32xf32>
    %51 = arith.addf %49, %50 : vector<1x32xf32>
    %cst_22 = arith.constant 0.000000e+00 : f32
    %52 = vector.broadcast %cst_22 : f32 to vector<1x32xf32>
    %53 = arith.maximumf %51, %52 : vector<1x32xf32>
    %c0_23 = arith.constant 0 : index
    %c48 = arith.constant 48 : index
    %54 = vector.load %arg3[%c0_23, %c48] : memref<72x128xf32, #tpu.memory_space<vmem>>, vector<32x50xf32>
    %cst_24 = arith.constant dense<0.000000e+00> : vector<1x50xf32>
    %55 = tpu.matmul %53, %54, %cst_24 {dimension_numbers = #tpu.dot_dimension_numbers<[1], [0], [0], [1], [0, 0, 1, 1], [], []>} : vector<1x32xf32>, vector<32x50xf32>, vector<1x50xf32> -> vector<1x50xf32>
    %c64_25 = arith.constant 64 : index
    %c48_26 = arith.constant 48 : index
    %56 = vector.load %arg3[%c64_25, %c48_26] : memref<72x128xf32, #tpu.memory_space<vmem>>, vector<1x50xf32>
    %57 = arith.addf %55, %56 : vector<1x50xf32>
    %cst_27 = arith.constant dense<0xFF800000> : vector<1xf32>
    %58 = vector.multi_reduction <maximumf>, %57, %cst_27 [1] : vector<1x50xf32> to vector<1xf32>
    %59 = vector.shape_cast %58 : vector<1xf32> to vector<1x1xf32>
    %60 = vector.broadcast %59 : vector<1x1xf32> to vector<1x50xf32>
    %61 = arith.subf %57, %60 : vector<1x50xf32>
    %62 = math.exp %61 : vector<1x50xf32>
    %cst_28 = arith.constant dense<0.000000e+00> : vector<1xf32>
    %63 = vector.multi_reduction <add>, %62, %cst_28 [1] : vector<1x50xf32> to vector<1xf32>
    %64 = vector.shape_cast %63 : vector<1xf32> to vector<1x1xf32>
    %65 = math.log %64 : vector<1x1xf32>
    %66 = vector.broadcast %65 : vector<1x1xf32> to vector<1x50xf32>
    %67 = arith.subf %61, %66 : vector<1x50xf32>
    %cst_29 = arith.constant 0.000000e+00 : f32
    %68 = vector.broadcast %cst_29 : f32 to vector<1x78xf32>
    %69 = tpu.concatenate %67, %68 in 1 : vector<1x50xf32>, vector<1x78xf32> -> vector<1x128xf32>
    %cst_30 = arith.constant 0.000000e+00 : f32
    %70 = vector.broadcast %cst_30 : f32 to vector<1x96xf32>
    %71 = tpu.concatenate %31, %70 in 1 : vector<1x32xf32>, vector<1x96xf32> -> vector<1x128xf32>
    %cst_31 = arith.constant 0.000000e+00 : f32
    %72 = vector.broadcast %cst_31 : f32 to vector<1x96xf32>
    %73 = tpu.concatenate %29, %72 in 1 : vector<1x32xf32>, vector<1x96xf32> -> vector<1x128xf32>
    %cst_32 = arith.constant 0.000000e+00 : f32
    %74 = vector.broadcast %cst_32 : f32 to vector<1x112xf32>
    %75 = tpu.concatenate %45, %74 in 1 : vector<1x16xf32>, vector<1x112xf32> -> vector<1x128xf32>
    %cst_33 = arith.constant 0.000000e+00 : f32
    %76 = vector.broadcast %cst_33 : f32 to vector<4x128xf32>
    %77 = tpu.concatenate %69, %71, %73, %75, %76 in 0 : vector<1x128xf32>, vector<1x128xf32>, vector<1x128xf32>, vector<1x128xf32>, vector<4x128xf32> -> vector<8x128xf32>
    %c0_34 = arith.constant 0 : index
    %c0_35 = arith.constant 0 : index
    %78 = vector.load %arg4[%c0_34, %c0_35] : memref<8x128xf32, #tpu.memory_space<vmem>>, vector<8x128xf32>
    tpu.vector_store %arg4[%c0_34, %c0_35], %77 {strides = array<i32>} : memref<8x128xf32, #tpu.memory_space<vmem>>, vector<8x128xf32>,
    return
  }
}

</mosaic_0001>

<bundles_post_ra>
// kernel: tpu_custom_call.1
= control target key start
LH: loop header
LB: loop body
LE: loop exit
PB: predicated region body
PF: predicated region fallthrough
CT: control target
= control target key end

     0   :  { %9 = vsyncpa [#allocation3], 0  ;;  %s672_s0 = inlined_call_operand.hbm [shape: f32[2,64], index: 0, kind: input, shape index: {}]   ;;  %s673_s1 = inlined_call_operand.hbm [shape: f32[16,32], index: 1, kind: input, shape index: {}]   ;;  %s674_s2 = inlined_call_operand.hbm [shape: f32[72,128], index: 2, kind: input, shape index: {}]   ;;  %s675_s3 = inlined_call_operand.hbm [shape: f32[72,128], index: 3, kind: input, shape index: {}]   ;;  %s676_s4 = inlined_call_operand.hbm [shape: f32[8,128], index: 4, kind: output, shape index: {}]  }
   0x1   :  { %10 = vsyncpa [#allocation6], 0 }
   0x2   :  { %11 = vsyncpa [#allocation9], 0  ;;  %s28_s17 = sshll.u32 %s673_s1, 4  ;;  %s29_s17 = int_to_ptr.hbm [resolvable:$true] %s28_s17 }
   0x3   :  { %12 = vsyncpa [#allocation4], 0  ;;  %s591_s18 = smov [#allocation5]   ;;  %s18_s22 = sshll.u32 %s672_s0, 4  ;;  %s19_s22 = int_to_ptr.hbm [resolvable:$true] %s18_s22 }
   0x4   :  { %s30_s19 = sshll.u32 %s591_s18, 4  ;;  %s592_s23 = smov 128   ;;  %s31_s19 = int_to_ptr.vmem [resolvable:$true] %s30_s19 }
   0x5   :  { %s593_s24 = smov 8   ;;  %s594_s25 = smov [#allocation2]  }
   0x6   :  { %36 = dma.hbm_to_vmem [thread:$0]  %s29_s17, 256, %s31_s19, [#allocation6], %s592_s23, %s592_s23, %s593_s24  }
   0x7   :  { %s20_s26 = sshll.u32 %s594_s25, 4  ;;  %s41_s29 = sshll.u32 %s674_s2, 4  ;;  %s21_s26 = int_to_ptr.vmem [resolvable:$true] %s20_s26  ;;  %s42_s29 = int_to_ptr.hbm [resolvable:$true] %s41_s29 }
   0x8   :  { %23 = dma.hbm_to_vmem [thread:$0]  %s19_s22, 32, %s21_s26, [#allocation3]  }
   0x9   :  { %s54_s5 = sshll.u32 %s675_s3, 4  ;;  %s595_s6 = smov [#allocation7]   ;;  %s55_s5 = int_to_ptr.hbm [resolvable:$true] %s54_s5 }
   0xa   :  { %s43_s7 = sshll.u32 %s595_s6, 4  ;;  %s596_s0 = smov [#allocation8]   ;;  %s44_s7 = int_to_ptr.vmem [resolvable:$true] %s43_s7 }
   0xb   :  { %49 = dma.hbm_to_vmem [thread:$0]  %s42_s29, 1152, %s44_s7, [#allocation6], %s592_s23, %s592_s23, %s593_s24  }
   0xc   :  { %s56_s8 = sshll.u32 %s596_s0, 4  ;;  %s57_s8 = int_to_ptr.vmem [resolvable:$true] %s56_s8 }
   0xd   :  { %62 = dma.hbm_to_vmem [thread:$0]  %s55_s5, 1152, %s57_s8, [#allocation9], %s592_s23, %s592_s23, %s593_s24  }
   0xe   :  { %583 = dma.done.wait [#allocation3], 32  }
   0xf   :  { %584 = vsyncadd [#allocation3], 4294967264 }
  0x10   :  { %585 = dma.done.wait [#allocation6], 1408  }
  0x11   :  { %586 = vsyncadd [#allocation6], 4294965888 }
  0x12   :  { %587 = dma.done.wait [#allocation9], 1152  }
  0x13   :  { %588 = vsyncadd [#allocation9], 4294966144  ;;  %v90_v0 = vld [vmem:[#allocation7 + $0x38] sm:$0xff]  ;;  %v89_v1 = vld [vmem:[#allocation7 + $0x30] sm:$0xff]  ;;  %vm92_vm0 = vcmask 523264   ;;  %s597_s2 = smov 64  }
  0x14   :  { %104 = vmatpush.msra.mxu0 %v90_v0  ;;  %v88_v2 = vld [vmem:[#allocation7 + $0x28] sm:$0xff]  ;;  %v87_v3 = vld [vmem:[#allocation7 + $0x20] sm:$0xff]  ;;  %v86_v4 = vld [vmem:[#allocation7 + $0x18] sm:$0xff]  ;;  %s598_s3 = smov 32   ;;  %vm165_vm5 = vcmask 261120   ;;  %vm188_vm6 = vcmask 122880  }
  0x15   :  { %v85_v5 = vld [vmem:[#allocation7 + $0x10] sm:$0xff]  ;;  %v84_v6 = vld [vmem:[#allocation7 + $0x8] sm:$0xff]  ;;  %v83_v7 = vld [vmem:[#allocation7] sm:$0xff]  ;;  %s599_s9 = smov 80   ;;  %s600_s10 = smov 96   ;;  %vm200_vm7 = vcmask 130048  }
  0x16   :  { %105 = vmatpush.msra.mxu0 %v89_v1  ;;  %v79_v8 = vld [vmem:[#allocation2] sm:$0x1]  ;;  %v91_v9 = vld [vmem:[#allocation7 + $0x40] sm:$0x1]  ;;  %v80_v13 = vld [vmem:[#allocation2 + $0x1] sm:$0x1] }
  0x17   :  { %v160_v34 = vld [vmem:[#allocation8 + $0x18] sm:$0xff]  ;;  %v159_v35 = vld [vmem:[#allocation8 + $0x10] sm:$0xff]  ;;  %v158_v37 = vld [vmem:[#allocation8 + $0x8] sm:$0xff]  ;;  %s601_s11 = smov 112   ;;  %vm340_vm8 = vcmask 401408   ;;  %vm353_vm9 = vcmask 408576  }
  0x18   :  { %106 = vmatpush.msra.mxu0 %v88_v2  ;;  %180 = vmatpush.msra.mxu1 %v160_v34  ;;  %v437_v36 = vpack.i.bf16 %v159_v35, %v160_v34  ;;  %v157_v38 = vld [vmem:[#allocation8] sm:$0xff]  ;;  %v82_v52 = vld [vmem:[#allocation5 + $0x8] sm:$0xff]  ;;  %v81_v53 = vld [vmem:[#allocation5] sm:$0xff]  ;;  %vm371_vm10 = vcmask 1040384   ;;  %vm373_vm11 = vcmask 1041408   ;;  %vm375_vm12 = vcmask 1042432  }
  0x19   :  { %v442_v39 = vpack.i.bf16 %v157_v38, %v158_v37  ;;  %v161_v43 = vld [vmem:[#allocation8 + $0x40] sm:$0x1]  ;;  %218 = vmatpush.msra.mxu2 %v82_v52  ;;  %v236_v54 = vld [vmem:[#allocation8 + $0x30] sm:$0xff]  ;;  %v237_v55 = vld [vmem:[#allocation8 + $0x38] sm:$0xff]  ;;  %s602_s12 = smov [#allocation10]   ;;  %s387_s16 = sshll.u32 %s676_s4, 4  ;;  %s388_s16 = int_to_ptr.hbm [resolvable:$true] %s387_s16 }
  0x1a   :  { %107 = vmatpush.msra.mxu0 %v87_v3  ;;  %181 = vmatpush.msra.mxu1 %v159_v35  ;;  %v417_v56 = vpack.i.bf16 %v236_v54, %v237_v55  ;;  %v234_v58 = vld [vmem:[#allocation8 + $0x20] sm:$0xff]  ;;  %v235_v59 = vld [vmem:[#allocation8 + $0x28] sm:$0xff]  ;;  %s385_s13 = sshll.u32 %s602_s12, 4  ;;  %vm377_vm13 = vcmask 1043456   ;;  %s386_s13 = int_to_ptr.vmem [resolvable:$true] %s385_s13 }
  0x1b   :  { %219 = vmatpush.msra.mxu2 %v81_v53  ;;  %v422_v60 = vpack.i.bf16 %v234_v58, %v235_v59 }
  0x1c   :  { %108 = vmatpush.msra.mxu0 %v86_v4  ;;  %182 = vmatpush.msra.mxu1 %v158_v37 }
  0x1e   :  { %109 = vmatpush.msra.mxu0 %v85_v5  ;;  %183 = vmatpush.msra.mxu1 %v157_v38 }
  0x20   :  { %110 = vmatpush.msra.mxu0 %v84_v6 }
  0x22   :  { %111 = vmatpush.msra.mxu0 %v83_v7 }
  0x23   :  { %399 = vmatmul.msk.f32.vlgmr.msra.gmra.mxu0 %vm92_vm0, %v79_v8 }
  0xa0   :  { %v113_v10 = vpop.f32.mrf.mxu0 }
  0xa1   :  { %v114_v11 = vadd.f32 %v113_v10, %v91_v9 }
  0xa3   :  { %447 = vtanh.f32 %v114_v11  ;;  %v400_v14 = vmul.f32 -1.442695, %v114_v11 }
  0xa5   :  { %449 = vpow2.f32 %v400_v14 }
  0xa9   :  { %v448_v12 = vpop.eup %447 }
  0xaa   :  { %142 = vrot.lane.b32.xlu0 %v448_v12, %s597_s2 }
  0xab   :  { %v450_v15 = vpop.eup %449 }
  0xac   :  { %v119_v16 = vadd.f32 1.0, %v450_v15 }
  0xae   :  { %451 = vrcp.f32 %v119_v16  ;;  %v131_v22 = vand.u32 2147483648, %v119_v16  ;;  %vm125_vm2 = vweird.f32 %v119_v16  ;;  %v129_v23 = vand.u32 2147483647, %v119_v16 }
  0xb0   :  { %v132_v25 = vor.u32 1.1754944e-38, %v131_v22  ;;  %vm130_vm4 = vcmp.eq.f32.partialorder %v129_v23, 8.507059e+37 }
  0xb2   :  { %137 = vrot.lane.b32.xlu0 %v80_v13, %s598_s3 }
  0xb4   :  { %v452_v17 = vpop.eup %451 }
  0xb5   :  { %v121_v18 = vmul.f32 %v452_v17, %v119_v16  ;;  %vm126_vm1 = vweird.f32 %v452_v17 }
  0xb6   :  { %vm127_vm3 = vmor %vm125_vm2, %vm126_vm1 }
  0xb7   :  { %v122_v19 = vsub.f32 1.0, %v121_v18 }
  0xb9   :  { %v123_v20 = vmul.f32 %v452_v17, %v122_v19 }
  0xbb   :  { %v124_v21 = vadd.f32 %v452_v17, %v123_v20 }
  0xbd   :  { %v128_v24 = vsel %vm127_vm3, %v452_v17, %v124_v21 }
  0xbe   :  { %v133_v27 = vsel %vm130_vm4, %v132_v25, %v128_v24 }
 0x11c   :  { %v143_v26 = vpop.permute.xlu0 %142 }
 0x11d   :  { %v145_v28 = vmul.f32 %v143_v26, %v133_v27 }
 0x11f   :  { %147 = vrot.lane.b32.xlu1 %v145_v28, %s598_s3 }
 0x124   :  { %v138_v29 = vpop.permute.xlu0 %137 }
 0x125   :  { %v140_v30 = vmul.f32 %v138_v29, %v133_v27 }
 0x191   :  { %v148_v31 = vpop.permute.xlu1 %147 }
 0x192   :  { %v150_v32 = vadd.f32 %v148_v31, %v140_v30 }
 0x194   :  { %453 = vtanh.f32 %v150_v32 }
 0x19a   :  { %v454_v33 = vpop.eup %453 }
 0x19b   :  { %153 = vrot.lane.b32.xlu1 %v454_v33, %s597_s2 }
 0x1a3   :  { %418 = vrot.lane.b32.xlu1 %v417_v56, %s601_s11 }
 0x1ab   :  { %423 = vrot.lane.b32.xlu1 %v422_v60, %s601_s11 }
 0x1b3   :  { %428 = vrot.lane.b32.xlu1 %v437_v36, %s601_s11 }
 0x1bb   :  { %433 = vrot.lane.b32.xlu1 %v442_v39, %s601_s11 }
 0x20d   :  { %v154_v40 = vpop.permute.xlu1 %153 }
 0x20e   :  { %v156_v41 = vmul.f32 %v154_v40, %v133_v27 }
 0x210   :  { %163 = vrot.lane.b32.xlu2 %v156_v41, %s598_s3 }
 0x215   :  { %v419_v0 = vpop.permute.xlu1 %418 }
 0x216   :  { %v420_v1 = vunpack.i.l.bf16 %v419_v0  ;;  %v421_v2 = vunpack.i.h.bf16 %v419_v0 }
 0x218   :  { %285 = vmatpush.msra.mxu3 %v420_v1 }
 0x21a   :  { %286 = vmatpush.msra.mxu3 %v421_v2 }
 0x21d   :  { %v424_v3 = vpop.permute.xlu1 %423 }
 0x21e   :  { %v425_v4 = vunpack.i.l.bf16 %v424_v3  ;;  %v426_v5 = vunpack.i.h.bf16 %v424_v3 }
 0x220   :  { %287 = vmatpush.msra.mxu3 %v425_v4 }
 0x222   :  { %288 = vmatpush.msra.mxu3 %v426_v5 }
 0x225   :  { %v429_v6 = vpop.permute.xlu1 %428 }
 0x226   :  { %v430_v7 = vunpack.i.l.bf16 %v429_v6  ;;  %v431_v8 = vunpack.i.h.bf16 %v429_v6 }
 0x228   :  { %289 = vmatpush.msra.mxu3 %v430_v7 }
 0x22a   :  { %290 = vmatpush.msra.mxu3 %v431_v8 }
 0x22d   :  { %v434_v9 = vpop.permute.xlu1 %433 }
 0x22e   :  { %v435_v10 = vunpack.i.l.bf16 %v434_v9  ;;  %v436_v11 = vunpack.i.h.bf16 %v434_v9 }
 0x230   :  { %291 = vmatpush.msra.mxu3 %v435_v10 }
 0x232   :  { %292 = vmatpush.msra.mxu3 %v436_v11 }
 0x26a   :  { %v646_v42 = vpop.permute.xlu2 %163 }
 0x26b   :  { %401 = vmatmul.msk.f32.vlgmr.msra.gmra.mxu1 %vm165_vm5, %v646_v42  ;;  %v355_v37 = vsel %vm165_vm5, %v646_v42, 0.0 }
 0x26c   :  { %v363_v41 = vrot.slane %v355_v37, 7 }
 0x2e8   :  { %v185_v44 = vpop.f32.mrf.mxu1 }
 0x2e9   :  { %v186_v45 = vadd.f32 %v185_v44, %v161_v43 }
 0x2eb   :  { %v189_v46 = vsel %vm188_vm6, %v186_v45, -inf }
 0x2ec   :  { %190 = vmax.xlane.f32.xlu2 %v189_v46 }
 0x304   :  { %438 = vrot.lane.b32.xlu2 %v437_v36, %s599_s9 }
 0x35f   :  { %v191_v47 = vpop.xlane.xlu2 %190 }
 0x360   :  { %v192_v48 = vsub.f32 %v186_v45, %v191_v47 }
 0x362   :  { %v193_v49 = vmul.f32 1.442695, %v192_v48 }
 0x364   :  { %455 = vpow2.f32 %v193_v49 }
 0x367   :  { %v439_v13 = vpop.permute.xlu2 %438 }
 0x368   :  { %v440_v14 = vunpack.i.l.bf16 %v439_v13  ;;  %v441_v15 = vunpack.i.h.bf16 %v439_v13 }
 0x36a   :  { %v456_v50 = vpop.eup %455  ;;  %332 = vmatpush.msrb.mxu2 %v440_v14 }
 0x36b   :  { %v195_v51 = vsel %vm188_vm6, %v456_v50, 0.0 }
 0x36c   :  { %196 = vadd.xlane.f32.xlu0 %v195_v51  ;;  %333 = vmatpush.msrb.mxu2 %v441_v15 }
 0x380   :  { %443 = vrot.lane.b32.xlu0 %v442_v39, %s599_s9 }
 0x388   :  { %357 = vrot.lane.b32.xlu0 %v150_v32, %s600_s10 }
 0x3df   :  { %v197_v57 = vpop.xlane.xlu0 %196 }
 0x3e0   :  { %457 = vrcp.f32 %v197_v57 }
 0x3e6   :  { %v458_v61 = vpop.eup %457 }
 0x3e7   :  { %v199_v62 = vmul.f32 %v458_v61, %v456_v50 }
 0x3e9   :  { %402 = vmatmul.msk.f32.vlgmr.msra.gmra.mxu2 %vm200_vm7, %v199_v62  ;;  %v654_v63 = vsel %vm200_vm7, %v199_v62, 0.0 }
 0x3ea   :  { %v369_v45 = vrot.slane %v654_v63, 5 }
 0x3f2   :  { %v444_v16 = vpop.permute.xlu0 %443 }
 0x3f3   :  { %v445_v17 = vunpack.i.l.bf16 %v444_v16  ;;  %v446_v20 = vunpack.i.h.bf16 %v444_v16 }
 0x3f5   :  { %334 = vmatpush.msrb.mxu2 %v445_v17 }
 0x3f7   :  { %335 = vmatpush.msrb.mxu2 %v446_v20 }
 0x3fa   :  { %v358_v35 = vpop.permute.xlu0 %357 }
 0x3fb   :  { %v360_v39 = vsel %vm165_vm5, %v358_v35, 0.0 }
 0x46c   :  { %v221_v12 = vpop.f32.mrf.mxu2 }
 0x46d   :  { %226 = vrot.lane.b32.xlu1 %v221_v12, %s598_s3 }
 0x475   :  { %271 = vrot.lane.b32.xlu1 %v161_v43, %s601_s11 }
 0x47d   :  { %314 = vrot.lane.b32.xlu1 %v161_v43, %s599_s9  ;;  %v366_v43 = vrot.slane %v360_v39, 6 }
 0x4df   :  { %v227_v18 = vpop.permute.xlu1 %226 }
 0x4e0   :  { %v229_v19 = vsel %vm165_vm5, %v646_v42, %v227_v18 }
 0x4e1   :  { %403 = vmatmul.msk.f32.vlgmr.msra.gmra.mxu3 %vm92_vm0, %v229_v19 }
 0x4e7   :  { %v272_v21 = vpop.permute.xlu1 %271 }
 0x4ef   :  { %v315_v25 = vpop.permute.xlu1 %314 }
 0x564   :  { %v294_v22 = vpop.f32.mrf.mxu3 }
 0x565   :  { %v295_v23 = vadd.f32 %v294_v22, %v272_v21 }
 0x567   :  { %v297_v24 = vmax.f32 %v295_v23, 0.0 }
 0x569   :  { %404 = vmatmul.msk.f32.vlgmr.msrb.gmra.mxu2 %vm165_vm5, %v297_v24 }
 0x5ec   :  { %v337_v26 = vpop.f32.mrf.mxu2 }
 0x5ed   :  { %v338_v27 = vadd.f32 %v337_v26, %v315_v25 }
 0x5ef   :  { %v341_v28 = vsel %vm340_vm8, %v338_v27, -inf }
 0x5f0   :  { %342 = vmax.xlane.f32.xlu1 %v341_v28 }
 0x663   :  { %v343_v29 = vpop.xlane.xlu1 %342 }
 0x664   :  { %v344_v30 = vsub.f32 %v338_v27, %v343_v29 }
 0x666   :  { %v345_v31 = vmul.f32 1.442695, %v344_v30 }
 0x668   :  { %459 = vpow2.f32 %v345_v31 }
 0x66e   :  { %v460_v32 = vpop.eup %459 }
 0x66f   :  { %v347_v33 = vsel %vm340_vm8, %v460_v32, 0.0 }
 0x670   :  { %348 = vadd.xlane.f32.xlu2 %v347_v33 }
 0x6e3   :  { %v349_v34 = vpop.xlane.xlu2 %348 }
 0x6e4   :  { %461 = vlog2.f32 %v349_v34 }
 0x6ea   :  { %v462_v36 = vpop.eup %461 }
 0x6eb   :  { %v351_v38 = vmul.f32 0.6931472, %v462_v36 }
 0x6ed   :  { %v352_v40 = vsub.f32 %v344_v30, %v351_v38 }
 0x6ef   :  { %v354_v44 = vsel %vm353_vm9, %v352_v40, 0.0 }
 0x6f0   :  { %v372_v42 = vsel %vm371_vm10, %v354_v44, %v363_v41 }
 0x6f1   :  { %v374_v46 = vsel %vm373_vm11, %v372_v42, %v366_v43 }
 0x6f2   :  { %v376_v47 = vsel %vm375_vm12, %v374_v46, %v369_v45 }
 0x6f3   :  { %v378_v48 = vsel %vm377_vm13, %v376_v47, 0.0 }
 0x6f4   :  { %379 = vst [vmem:[#allocation10] sm:$0xff] %v378_v48 }
 0x6f5   :  { %390 = dma.vmem_to_hbm [thread:$0]  %s386_s13, 128, %s388_s16, [#allocation4]  }
 0x6f6   :  { %589 = dma.done.wait [#allocation4], 128  }
 0x6f7   :  { %590 = vsyncadd [#allocation4], 4294967168 }
 0x6f8   :  { %395 = vsyncpa [#allocation3], 1 }
 0x6f9   :  { %396 = vsyncpa [#allocation6], 1 }
 0x6fa   :  { %397 = vsyncpa [#allocation9], 1 }
 0x6fb   :  { %398 = vsyncpa [#allocation4], 1 }

</bundles_post_ra>
